<compile_context>
chip_gen: v5e
topology: v5e:2x2
jax: 0.10.0
libtpu: 0.0.40
codegen_flags: <defaults>
</compile_context>

<pallas_src>
import functools

import jax
import jax.numpy as jnp
from jax.experimental import pallas as pl
from jax.experimental.pallas import tpu as pltpu

_LANE = 128   # vreg lane width  -> feature-dim padding
_SUB = 16     # bf16 sublane packing -> node-count padding


def _round_up(n, m):
    return (n + m - 1) // m * m


def _pad_to(x, rows, cols):
    return jnp.pad(x, ((0, rows - x.shape[0]), (0, cols - x.shape[1])))


def _dropout_half(x, seed):
    """Inverted dropout, p = 0.5, via a counter-based integer hash (VPU only).

    Avoids pltpu.prng_* so the kernel also runs under the TPU interpreter.
    Deterministic given `seed`.
    """
    n, m = x.shape
    row = jax.lax.broadcasted_iota(jnp.int32, (n, m), 0)
    col = jax.lax.broadcasted_iota(jnp.int32, (n, m), 1)
    z = (row * m + col).astype(jnp.uint32)
    z = z + seed.astype(jnp.uint32) * jnp.uint32(0x9E3779B9)
    z = (z ^ (z >> 16)) * jnp.uint32(0x7FEB352D)
    z = (z ^ (z >> 15)) * jnp.uint32(0x846CA68B)
    z = z ^ (z >> 16)
    keep = (z & jnp.uint32(0x80000000)) == 0          # P(keep) = 0.5 (high bit)
    return jnp.where(keep, x * 2.0, 0.0)


def _fused_sage_kernel(seeds_ref,
                       a0_ref, a1_ref, a2_ref,
                       w0_ref, w1_ref, w2_ref,
                       b0_ref, b1_ref, b2_ref,
                       x_ref, o_ref, *, n_dst):
    """Whole 3-layer forward in one invocation; all tensors resident in VMEM."""
    layers = ((a0_ref, w0_ref, b0_ref),
              (a1_ref, w1_ref, b1_ref),
              (a2_ref, w2_ref, b2_ref))
    h = x_ref[...]                                    # (n_src0_pad, F_pad) f32
    for l, (a_ref, w_ref, b_ref) in enumerate(layers):
        nd = n_dst[l]
        h_bf = h.astype(jnp.bfloat16)                 # MXU operands in bf16
        # Mean aggregation: A is pre-normalized by in-degree (zero-deg rows -> 0).
        h_neigh = jnp.dot(a_ref[...], h_bf, preferred_element_type=jnp.float32)
        # Fused self + neighbour projection: [h_dst | h_neigh] @ [[W_self],[W_neigh]]
        # -> single MXU pass with K = 2 * F_pad.  h_dst reuses the loaded h.
        h_cat = jnp.concatenate(
            [h_bf[:nd, :], h_neigh.astype(jnp.bfloat16)], axis=1)
        out = jnp.dot(h_cat, w_ref[...],
                      preferred_element_type=jnp.float32) + b_ref[...]
        if l != len(layers) - 1:
            out = jnp.maximum(out, 0.0)               # ReLU (f32 on VPU)
            out = _dropout_half(out, seeds_ref[l])    # Dropout(p=0.5), scale 2x
        h = out
    o_ref[...] = h.astype(o_ref.dtype)                # lane-dense (F_pad=128) store


def sage_forward(blocks, x, params, seeds):
    """Fused 3-layer GraphSAGE forward.

    blocks: 3 dense row-normalized adjacencies, blocks[l]: (n_dst[l], n_src[l]),
            with n_src[l+1] == n_dst[l] (DGL block chaining).
    x:      (n_src[0], in_feats) float32 source features of the first block.
    params: 3 tuples (W_self (fin,fout), W_neigh (fin,fout), bias (fout,)).
    seeds:  3 int dropout seeds (the last one is unused).
    """
    assert len(blocks) == len(params) == 3
    n_dst = [b.shape[0] for b in blocks]
    n_src = [b.shape[1] for b in blocks]
    for l in range(1, 3):
        assert n_src[l] == n_dst[l - 1], "blocks must chain (n_src[l+1]==n_dst[l])"

    n_dst_p = [_round_up(n, _SUB) for n in n_dst]
    n_src_p = [_round_up(n, _SUB) for n in n_src]
    fin = [p[0].shape[0] for p in params]
    fout = [p[0].shape[1] for p in params]
    fin_p = [_round_up(f, _LANE) for f in fin]
    fout_p = [_round_up(f, _LANE) for f in fout]

    # Zero-padding keeps the math exact: padded A rows/cols are 0, padded weight
    # rows/cols and bias entries are 0, so padded lanes/rows never contaminate
    # real outputs; the final result is sliced back to the real shape.
    x_p = _pad_to(x, n_src_p[0], fin_p[0]).astype(jnp.float32)

    a_p, w_p, b_p = [], [], []
    for l in range(3):
        a = _pad_to(blocks[l], n_dst_p[l], n_src_p[l]).astype(jnp.bfloat16)
        w_self, w_neigh, bias = params[l]
        ws = _pad_to(w_self, fin_p[l], fout_p[l])
        wn = _pad_to(w_neigh, fin_p[l], fout_p[l])
        w_cat = jnp.concatenate([ws, wn], axis=0).astype(jnp.bfloat16)  # (2F, Fout)
        b = _pad_to(jnp.reshape(bias, (1, -1)), 1, fout_p[l]).astype(jnp.float32)
        a_p.append(a)
        w_p.append(w_cat)
        b_p.append(b)

    seeds_arr = jnp.asarray(list(seeds), jnp.int32).reshape(3)

    vmem = pl.BlockSpec(memory_space=pltpu.MemorySpace.VMEM)
    smem = pl.BlockSpec(memory_space=pltpu.MemorySpace.SMEM)

    flops = 0
    for l in range(3):
        flops += 2 * n_dst_p[l] * n_src_p[l] * fin_p[l]          # A @ h
        flops += 2 * n_dst_p[l] * (2 * fin_p[l]) * fout_p[l]     # fused projection
    bytes_accessed = (x_p.size * 4
                      + sum(a.size * 2 for a in a_p)
                      + sum(w.size * 2 for w in w_p)
                      + sum(b.size * 4 for b in b_p)
                      + n_dst_p[-1] * fout_p[-1] * 4)

    kernel = functools.partial(_fused_sage_kernel, n_dst=tuple(n_dst_p))
    out_p = pl.pallas_call(
        kernel,
        out_shape=jax.ShapeDtypeStruct((n_dst_p[-1], fout_p[-1]), jnp.float32),
        in_specs=[smem] + [vmem] * 10,
        out_specs=vmem,
        cost_estimate=pl.CostEstimate(flops=flops, transcendentals=0,
                                      bytes_accessed=bytes_accessed),
    )(seeds_arr, *a_p, *w_p, *b_p, x_p)

    # TODO(synk): for production graph sizes, tile A over a grid (n_dst axis
    # "parallel", n_src reduction axis last/"arbitrary") with a f32 accumulator,
    # budgeted against v7x's 64 MiB VMEM.
    return out_p[:n_dst[-1], :fout[-1]]


def make_block(key, n_dst, n_src):
    # Random bipartite block; mean-normalized rows (zero-degree rows stay zero).
    adj = (jax.random.uniform(key, (n_dst, n_src)) < 0.3).astype(jnp.float32)
    deg = jnp.maximum(adj.sum(axis=1, keepdims=True), 1.0)
    return adj / deg


def init_sage_params(key, in_feats, n_hidden, n_classes):
    dims = [(in_feats, n_hidden), (n_hidden, n_hidden), (n_hidden, n_classes)]
    params = []
    for (fin, fout) in dims:
        key, k1, k2 = jax.random.split(key, 3)
        scale = 1.0 / jnp.sqrt(jnp.float32(fin))
        w_self = jax.random.uniform(k1, (fin, fout), jnp.float32, -scale, scale)
        w_neigh = jax.random.uniform(k2, (fin, fout), jnp.float32, -scale, scale)
        b = jnp.zeros((fout,), jnp.float32)
        params.append((w_self, w_neigh, b))
    return params


if __name__ == "__main__":
    key = jax.random.PRNGKey(0)

    in_feats, n_hidden, n_classes = 32, 32, 8
    n_src = [64, 48, 32]   # src node counts per block
    n_dst = [48, 32, 16]   # dst node counts per block (== src of the next block)

    key, kx, kb0, kb1, kb2, kp = jax.random.split(key, 6)
    x = jax.random.normal(kx, (n_src[0], in_feats), jnp.float32)
    blocks = [make_block(kb0, n_dst[0], n_src[0]),
              make_block(kb1, n_dst[1], n_src[1]),
              make_block(kb2, n_dst[2], n_src[2])]
    params = init_sage_params(kp, in_feats, n_hidden, n_classes)
    seeds = [1, 2, 3]      # last seed unused (no dropout on the final layer)

    out = sage_forward(blocks, x, params, seeds)
    out = jax.block_until_ready(out)
    assert out.shape == (n_dst[-1], n_classes), out.shape
    print("KERNEL_OK")
</pallas_src>

<mosaic_0001>
module attributes {stable_mosaic.version = 11 : i64} {
  func.func @_fused_sage_kernel(%arg0: memref<3xi32, #tpu.memory_space<smem>>, %arg1: memref<48x64xbf16, #tpu.memory_space<vmem>>, %arg2: memref<32x48xbf16, #tpu.memory_space<vmem>>, %arg3: memref<16x32xbf16, #tpu.memory_space<vmem>>, %arg4: memref<256x128xbf16, #tpu.memory_space<vmem>>, %arg5: memref<256x128xbf16, #tpu.memory_space<vmem>>, %arg6: memref<256x128xbf16, #tpu.memory_space<vmem>>, %arg7: memref<1x128xf32, #tpu.memory_space<vmem>>, %arg8: memref<1x128xf32, #tpu.memory_space<vmem>>, %arg9: memref<1x128xf32, #tpu.memory_space<vmem>>, %arg10: memref<64x128xf32, #tpu.memory_space<vmem>>, %arg11: memref<16x128xf32, #tpu.memory_space<vmem>>) attributes {dimension_semantics = [], scalar_prefetch = 0 : i64, scratch_operands = 0 : i64, tpu.core_type = #tpu.core_type<tc>} {
    %c0 = arith.constant 0 : index
    %c0_0 = arith.constant 0 : index
    %0 = vector.load %arg10[%c0, %c0_0] : memref<64x128xf32, #tpu.memory_space<vmem>>, vector<64x128xf32>
    %1 = arith.truncf %0 : vector<64x128xf32> to vector<64x128xbf16>
    %c0_1 = arith.constant 0 : index
    %c0_2 = arith.constant 0 : index
    %2 = vector.load %arg1[%c0_1, %c0_2] : memref<48x64xbf16, #tpu.memory_space<vmem>>, vector<48x64xbf16>
    %cst = arith.constant dense<0.000000e+00> : vector<48x128xf32>
    %3 = tpu.matmul %2, %1, %cst {dimension_numbers = #tpu.dot_dimension_numbers<[1], [0], [0], [1], [0, 0, 1, 1], [], []>} : vector<48x64xbf16>, vector<64x128xbf16>, vector<48x128xf32> -> vector<48x128xf32>
    %4 = vector.extract_strided_slice %1 {offsets = [0, 0], sizes = [48, 128], strides = [1, 1]} : vector<64x128xbf16> to vector<48x128xbf16>
    %5 = arith.truncf %3 : vector<48x128xf32> to vector<48x128xbf16>
    %6 = tpu.concatenate %4, %5 in 1 : vector<48x128xbf16>, vector<48x128xbf16> -> vector<48x256xbf16>
    %c0_3 = arith.constant 0 : index
    %c0_4 = arith.constant 0 : index
    %7 = vector.load %arg4[%c0_3, %c0_4] : memref<256x128xbf16, #tpu.memory_space<vmem>>, vector<256x128xbf16>
    %cst_5 = arith.constant dense<0.000000e+00> : vector<48x128xf32>
    %8 = tpu.matmul %6, %7, %cst_5 {dimension_numbers = #tpu.dot_dimension_numbers<[1], [0], [0], [1], [0, 0, 1, 1], [], []>} : vector<48x256xbf16>, vector<256x128xbf16>, vector<48x128xf32> -> vector<48x128xf32>
    %c0_6 = arith.constant 0 : index
    %c0_7 = arith.constant 0 : index
    %9 = vector.load %arg7[%c0_6, %c0_7] : memref<1x128xf32, #tpu.memory_space<vmem>>, vector<1x128xf32>
    %10 = vector.broadcast %9 : vector<1x128xf32> to vector<48x128xf32>
    %11 = arith.addf %8, %10 : vector<48x128xf32>
    %cst_8 = arith.constant 0.000000e+00 : f32
    %12 = vector.broadcast %cst_8 : f32 to vector<48x128xf32>
    %13 = arith.maximumf %11, %12 : vector<48x128xf32>
    %c0_9 = arith.constant 0 : index
    %14 = memref.load %arg0[%c0_9] : memref<3xi32, #tpu.memory_space<smem>>
    %15 = tpu.iota {dimensions = array<i32: 0>} : vector<48x128xi32>
    %16 = tpu.iota {dimensions = array<i32: 1>} : vector<48x128xi32>
    %c128_i32 = arith.constant 128 : i32
    %17 = vector.broadcast %c128_i32 : i32 to vector<48x128xi32>
    %18 = arith.muli %15, %17 : vector<48x128xi32>
    %19 = arith.addi %18, %16 : vector<48x128xi32>
    %c-1640531527_i32 = arith.constant -1640531527 : i32
    %20 = arith.muli %14, %c-1640531527_i32 : i32
    %21 = vector.broadcast %20 : i32 to vector<48x128xi32>
    %22 = arith.addi %19, %21 : vector<48x128xi32>
    %c16_i32 = arith.constant 16 : i32
    %23 = vector.broadcast %c16_i32 : i32 to vector<48x128xi32>
    %24 = arith.shrui %22, %23 : vector<48x128xi32>
    %25 = arith.xori %22, %24 : vector<48x128xi32>
    %c2146121005_i32 = arith.constant 2146121005 : i32
    %26 = vector.broadcast %c2146121005_i32 : i32 to vector<48x128xi32>
    %27 = arith.muli %25, %26 : vector<48x128xi32>
    %c15_i32 = arith.constant 15 : i32
    %28 = vector.broadcast %c15_i32 : i32 to vector<48x128xi32>
    %29 = arith.shrui %27, %28 : vector<48x128xi32>
    %30 = arith.xori %27, %29 : vector<48x128xi32>
    %c-2073254261_i32 = arith.constant -2073254261 : i32
    %31 = vector.broadcast %c-2073254261_i32 : i32 to vector<48x128xi32>
    %32 = arith.muli %30, %31 : vector<48x128xi32>
    %c16_i32_10 = arith.constant 16 : i32
    %33 = vector.broadcast %c16_i32_10 : i32 to vector<48x128xi32>
    %34 = arith.shrui %32, %33 : vector<48x128xi32>
    %35 = arith.xori %32, %34 : vector<48x128xi32>
    %c-2147483648_i32 = arith.constant -2147483648 : i32
    %36 = vector.broadcast %c-2147483648_i32 : i32 to vector<48x128xi32>
    %37 = arith.andi %35, %36 : vector<48x128xi32>
    %c0_i32 = arith.constant 0 : i32
    %38 = vector.broadcast %c0_i32 : i32 to vector<48x128xi32>
    %39 = arith.cmpi eq, %37, %38 : vector<48x128xi32>
    %cst_11 = arith.constant 2.000000e+00 : f32
    %40 = vector.broadcast %cst_11 : f32 to vector<48x128xf32>
    %41 = arith.mulf %13, %40 : vector<48x128xf32>
    %cst_12 = arith.constant 0.000000e+00 : f32
    %42 = vector.broadcast %cst_12 : f32 to vector<48x128xf32>
    %43 = arith.select %39, %41, %42 : vector<48x128xi1>, vector<48x128xf32>
    %44 = arith.truncf %43 : vector<48x128xf32> to vector<48x128xbf16>
    %c0_13 = arith.constant 0 : index
    %c0_14 = arith.constant 0 : index
    %45 = vector.load %arg2[%c0_13, %c0_14] : memref<32x48xbf16, #tpu.memory_space<vmem>>, vector<32x48xbf16>
    %cst_15 = arith.constant dense<0.000000e+00> : vector<32x128xf32>
    %46 = tpu.matmul %45, %44, %cst_15 {dimension_numbers = #tpu.dot_dimension_numbers<[1], [0], [0], [1], [0, 0, 1, 1], [], []>} : vector<32x48xbf16>, vector<48x128xbf16>, vector<32x128xf32> -> vector<32x128xf32>
    %47 = vector.extract_strided_slice %44 {offsets = [0, 0], sizes = [32, 128], strides = [1, 1]} : vector<48x128xbf16> to vector<32x128xbf16>
    %48 = arith.truncf %46 : vector<32x128xf32> to vector<32x128xbf16>
    %49 = tpu.concatenate %47, %48 in 1 : vector<32x128xbf16>, vector<32x128xbf16> -> vector<32x256xbf16>
    %c0_16 = arith.constant 0 : index
    %c0_17 = arith.constant 0 : index
    %50 = vector.load %arg5[%c0_16, %c0_17] : memref<256x128xbf16, #tpu.memory_space<vmem>>, vector<256x128xbf16>
    %cst_18 = arith.constant dense<0.000000e+00> : vector<32x128xf32>
    %51 = tpu.matmul %49, %50, %cst_18 {dimension_numbers = #tpu.dot_dimension_numbers<[1], [0], [0], [1], [0, 0, 1, 1], [], []>} : vector<32x256xbf16>, vector<256x128xbf16>, vector<32x128xf32> -> vector<32x128xf32>
    %c0_19 = arith.constant 0 : index
    %c0_20 = arith.constant 0 : index
    %52 = vector.load %arg8[%c0_19, %c0_20] : memref<1x128xf32, #tpu.memory_space<vmem>>, vector<1x128xf32>
    %53 = vector.broadcast %52 : vector<1x128xf32> to vector<32x128xf32>
    %54 = arith.addf %51, %53 : vector<32x128xf32>
    %cst_21 = arith.constant 0.000000e+00 : f32
    %55 = vector.broadcast %cst_21 : f32 to vector<32x128xf32>
    %56 = arith.maximumf %54, %55 : vector<32x128xf32>
    %c1 = arith.constant 1 : index
    %57 = memref.load %arg0[%c1] : memref<3xi32, #tpu.memory_space<smem>>
    %58 = tpu.iota {dimensions = array<i32: 0>} : vector<32x128xi32>
    %59 = tpu.iota {dimensions = array<i32: 1>} : vector<32x128xi32>
    %c128_i32_22 = arith.constant 128 : i32
    %60 = vector.broadcast %c128_i32_22 : i32 to vector<32x128xi32>
    %61 = arith.muli %58, %60 : vector<32x128xi32>
    %62 = arith.addi %61, %59 : vector<32x128xi32>
    %c-1640531527_i32_23 = arith.constant -1640531527 : i32
    %63 = arith.muli %57, %c-1640531527_i32_23 : i32
    %64 = vector.broadcast %63 : i32 to vector<32x128xi32>
    %65 = arith.addi %62, %64 : vector<32x128xi32>
    %c16_i32_24 = arith.constant 16 : i32
    %66 = vector.broadcast %c16_i32_24 : i32 to vector<32x128xi32>
    %67 = arith.shrui %65, %66 : vector<32x128xi32>
    %68 = arith.xori %65, %67 : vector<32x128xi32>
    %c2146121005_i32_25 = arith.constant 2146121005 : i32
    %69 = vector.broadcast %c2146121005_i32_25 : i32 to vector<32x128xi32>
    %70 = arith.muli %68, %69 : vector<32x128xi32>
    %c15_i32_26 = arith.constant 15 : i32
    %71 = vector.broadcast %c15_i32_26 : i32 to vector<32x128xi32>
    %72 = arith.shrui %70, %71 : vector<32x128xi32>
    %73 = arith.xori %70, %72 : vector<32x128xi32>
    %c-2073254261_i32_27 = arith.constant -2073254261 : i32
    %74 = vector.broadcast %c-2073254261_i32_27 : i32 to vector<32x128xi32>
    %75 = arith.muli %73, %74 : vector<32x128xi32>
    %c16_i32_28 = arith.constant 16 : i32
    %76 = vector.broadcast %c16_i32_28 : i32 to vector<32x128xi32>
    %77 = arith.shrui %75, %76 : vector<32x128xi32>
    %78 = arith.xori %75, %77 : vector<32x128xi32>
    %c-2147483648_i32_29 = arith.constant -2147483648 : i32
    %79 = vector.broadcast %c-2147483648_i32_29 : i32 to vector<32x128xi32>
    %80 = arith.andi %78, %79 : vector<32x128xi32>
    %c0_i32_30 = arith.constant 0 : i32
    %81 = vector.broadcast %c0_i32_30 : i32 to vector<32x128xi32>
    %82 = arith.cmpi eq, %80, %81 : vector<32x128xi32>
    %cst_31 = arith.constant 2.000000e+00 : f32
    %83 = vector.broadcast %cst_31 : f32 to vector<32x128xf32>
    %84 = arith.mulf %56, %83 : vector<32x128xf32>
    %cst_32 = arith.constant 0.000000e+00 : f32
    %85 = vector.broadcast %cst_32 : f32 to vector<32x128xf32>
    %86 = arith.select %82, %84, %85 : vector<32x128xi1>, vector<32x128xf32>
    %87 = arith.truncf %86 : vector<32x128xf32> to vector<32x128xbf16>
    %c0_33 = arith.constant 0 : index
    %c0_34 = arith.constant 0 : index
    %88 = vector.load %arg3[%c0_33, %c0_34] : memref<16x32xbf16, #tpu.memory_space<vmem>>, vector<16x32xbf16>
    %cst_35 = arith.constant dense<0.000000e+00> : vector<16x128xf32>
    %89 = tpu.matmul %88, %87, %cst_35 {dimension_numbers = #tpu.dot_dimension_numbers<[1], [0], [0], [1], [0, 0, 1, 1], [], []>} : vector<16x32xbf16>, vector<32x128xbf16>, vector<16x128xf32> -> vector<16x128xf32>
    %90 = vector.extract_strided_slice %87 {offsets = [0, 0], sizes = [16, 128], strides = [1, 1]} : vector<32x128xbf16> to vector<16x128xbf16>
    %91 = arith.truncf %89 : vector<16x128xf32> to vector<16x128xbf16>
    %92 = tpu.concatenate %90, %91 in 1 : vector<16x128xbf16>, vector<16x128xbf16> -> vector<16x256xbf16>
    %c0_36 = arith.constant 0 : index
    %c0_37 = arith.constant 0 : index
    %93 = vector.load %arg6[%c0_36, %c0_37] : memref<256x128xbf16, #tpu.memory_space<vmem>>, vector<256x128xbf16>
    %cst_38 = arith.constant dense<0.000000e+00> : vector<16x128xf32>
    %94 = tpu.matmul %92, %93, %cst_38 {dimension_numbers = #tpu.dot_dimension_numbers<[1], [0], [0], [1], [0, 0, 1, 1], [], []>} : vector<16x256xbf16>, vector<256x128xbf16>, vector<16x128xf32> -> vector<16x128xf32>
    %c0_39 = arith.constant 0 : index
    %c0_40 = arith.constant 0 : index
    %95 = vector.load %arg9[%c0_39, %c0_40] : memref<1x128xf32, #tpu.memory_space<vmem>>, vector<1x128xf32>
    %96 = vector.broadcast %95 : vector<1x128xf32> to vector<16x128xf32>
    %97 = arith.addf %94, %96 : vector<16x128xf32>
    %c0_41 = arith.constant 0 : index
    %c0_42 = arith.constant 0 : index
    %98 = vector.load %arg11[%c0_41, %c0_42] : memref<16x128xf32, #tpu.memory_space<vmem>>, vector<16x128xf32>
    tpu.vector_store %arg11[%c0_41, %c0_42], %97 {strides = array<i32>} : memref<16x128xf32, #tpu.memory_space<vmem>>, vector<16x128xf32>,
    return
  }
}

</mosaic_0001>

<bundles_post_ra>
// kernel: tpu_custom_call.1
= control target key start
LH: loop header
LB: loop body
LE: loop exit
PB: predicated region body
PF: predicated region fallthrough
CT: control target
= control target key end

     0   :  { %16 = vsyncpa [#allocation5], 0  ;;  %s1782_s0 = inlined_call_operand.hbm [shape: s32[3], index: 0, kind: input, shape index: {}]   ;;  %s1783_s1 = inlined_call_operand.hbm [shape: bf16[48,64], index: 1, kind: input, shape index: {}]   ;;  %s1784_s2 = inlined_call_operand.hbm [shape: bf16[32,48], index: 2, kind: input, shape index: {}]   ;;  %s1785_s3 = inlined_call_operand.hbm [shape: bf16[16,32], index: 3, kind: input, shape index: {}]   ;;  %s1786_s4 = inlined_call_operand.hbm [shape: bf16[256,128], index: 4, kind: input, shape index: {}]   ;;  %s1787_s5 = inlined_call_operand.hbm [shape: bf16[256,128], index: 5, kind: input, shape index: {}]   ;;  %s1788_s6 = inlined_call_operand.hbm [shape: bf16[256,128], index: 6, kind: input, shape index: {}]   ;;  %s1789_s7 = inlined_call_operand.vmem [shape: f32[1,128], index: 7, kind: input, shape index: {}]   ;;  %s1790_s8 = inlined_call_operand.vmem [shape: f32[1,128], index: 8, kind: input, shape index: {}]   ;;  %s1791_s9 = inlined_call_operand.vmem [shape: f32[1,128], index: 9, kind: input, shape index: {}]   ;;  %s1792_s10 = inlined_call_operand.hbm [shape: f32[64,128], index: 10, kind: input, shape index: {}]   ;;  %s1793_s11 = inlined_call_operand.hbm [shape: f32[16,128], index: 11, kind: output, shape index: {}]  }
   0x1   :  { %17 = vsyncpa [#allocation3], 0 }
   0x2   :  { %18 = vsyncpa [#allocation8], 0 }
   0x3   :  { %19 = vsyncpa [#allocation11], 0 }
   0x4   :  { %20 = vsyncpa [#allocation14], 0 }
   0x5   :  { %21 = vsyncpa [#allocation4], 0  ;;  %s48_s19 = sshll.u32 %s1784_s2, 4  ;;  %s1621_s20 = smov [#allocation7]   ;;  %s49_s19 = int_to_ptr.hbm [resolvable:$true] %s48_s19 }
   0x6   :  { %s50_s21 = sshll.u32 %s1621_s20, 4  ;;  %s74_s24 = sshll.u32 %s1786_s4, 4  ;;  %s51_s21 = int_to_ptr.vmem [resolvable:$true] %s50_s21  ;;  %s75_s24 = int_to_ptr.hbm [resolvable:$true] %s74_s24 }
   0x7   :  { %s1622_s25 = smov 64   ;;  %s1623_s26 = smov 4  }
   0x8   :  { %56 = dma.hbm_to_vmem [thread:$0]  %s49_s19, 256, %s51_s21, [#allocation8], %s1622_s25, %s1622_s25, %s1623_s26  }
   0x9   :  { %s1624_s27 = smov [#allocation10]   ;;  %s100_s2 = sshll.u32 %s1788_s6, 4  ;;  %s101_s2 = int_to_ptr.hbm [resolvable:$true] %s100_s2 }
   0xa   :  { %s76_s28 = sshll.u32 %s1624_s27, 4  ;;  %s27_s13 = sshll.u32 %s1782_s0, 4  ;;  %s77_s28 = int_to_ptr.vmem [resolvable:$true] %s76_s28  ;;  %s28_s13 = int_to_ptr.hbm [resolvable:$true] %s27_s13 }
   0xb   :  { %82 = dma.hbm_to_vmem [thread:$0]  %s75_s24, 2048, %s77_s28, [#allocation11], %s1622_s25, %s1622_s25, %s1623_s26  }
   0xc   :  { %s1625_s14 = smov [#allocation13]   ;;  %s1626_s16 = smov [#allocation2]  }
   0xd   :  { %s102_s15 = sshll.u32 %s1625_s14, 4  ;;  %s35_s18 = sshll.u32 %s1783_s1, 4  ;;  %s103_s15 = int_to_ptr.vmem [resolvable:$true] %s102_s15  ;;  %s36_s18 = int_to_ptr.hbm [resolvable:$true] %s35_s18 }
   0xe   :  { %108 = dma.hbm_to_vmem [thread:$0]  %s101_s2, 2048, %s103_s15, [#allocation14], %s1622_s25, %s1622_s25, %s1623_s26  }
   0xf   :  { %30 = dma.hbm_to_smem %s28_s13, 16, %s1626_s16, [#allocation5]  }
  0x10   :  { %s1627_s19 = smov [#allocation6]   ;;  %s61_s22 = sshll.u32 %s1785_s3, 4  ;;  %s62_s22 = int_to_ptr.hbm [resolvable:$true] %s61_s22 }
  0x11   :  { %s37_s20 = sshll.u32 %s1627_s19, 4  ;;  %s1628_s23 = smov [#allocation9]   ;;  %s38_s20 = int_to_ptr.vmem [resolvable:$true] %s37_s20 }
  0x12   :  { %43 = dma.hbm_to_vmem [thread:$0]  %s36_s18, 384, %s38_s20, [#allocation3], %s1622_s25, %s1622_s25, %s1623_s26  }
  0x13   :  { %s63_s24 = sshll.u32 %s1628_s23, 4  ;;  %s87_s29 = sshll.u32 %s1787_s5, 4  ;;  %s64_s24 = int_to_ptr.vmem [resolvable:$true] %s63_s24  ;;  %s88_s29 = int_to_ptr.hbm [resolvable:$true] %s87_s29 }
  0x14   :  { %69 = dma.hbm_to_vmem [thread:$0]  %s62_s22, 128, %s64_s24, [#allocation8], %s1622_s25, %s1622_s25, %s1623_s26  }
  0x15   :  { %s119_s3 = sshll.u32 %s1792_s10, 4  ;;  %s1629_s2 = smov [#allocation12]   ;;  %s120_s3 = int_to_ptr.hbm [resolvable:$true] %s119_s3 }
  0x16   :  { %s89_s4 = sshll.u32 %s1629_s2, 4  ;;  %s1630_s12 = smov [#allocation15]   ;;  %s90_s4 = int_to_ptr.vmem [resolvable:$true] %s89_s4 }
  0x17   :  { %95 = dma.hbm_to_vmem [thread:$0]  %s88_s29, 2048, %s90_s4, [#allocation11], %s1622_s25, %s1622_s25, %s1623_s26  }
  0x18   :  { %s121_s5 = sshll.u32 %s1630_s12, 4  ;;  %s1631_s13 = smov 128   ;;  %s122_s5 = int_to_ptr.vmem [resolvable:$true] %s121_s5 }
  0x19   :  { %s1632_s14 = smov 8  }
  0x1a   :  { %127 = dma.hbm_to_vmem [thread:$0]  %s120_s3, 1024, %s122_s5, [#allocation14], %s1631_s13, %s1631_s13, %s1632_s14  }
  0x1b   :  { %1609 = dma.done.wait [#allocation5], 16  }
  0x1c   :  { %1610 = vsyncadd [#allocation5], 4294967280 }
  0x1d   :  { %1611 = dma.done.wait [#allocation3], 384  }
  0x1e   :  { %1612 = vsyncadd [#allocation3], 4294966912 }
  0x1f   :  { %1613 = dma.done.wait [#allocation8], 384  }
  0x20   :  { %1614 = vsyncadd [#allocation8], 4294966912 }
  0x21   :  { %1615 = dma.done.wait [#allocation11], 4096  }
  0x22   :  { %1616 = vsyncadd [#allocation11], 4294963200 }
  0x23   :  { %1617 = dma.done.wait [#allocation14], 3072  }
  0x24   :  { %1618 = vsyncadd [#allocation14], 4294964224 }
  0x25   :  { %160 = sfence }
  0x26   :  { %v168_v0 = vld [vmem:[#allocation15 + $0x30] sm:$0xff]  ;;  %v169_v1 = vld [vmem:[#allocation15 + $0x38] sm:$0xff]  ;;  %v166_v2 = vld [vmem:[#allocation15 + $0x20] sm:$0xff]  ;;  %vm223_vm0 = vcmask 523264   ;;  %s467_s10 = sld [smem:[#allocation2]]  ;;  %vm607_vm7 = vcmask 392192  }
  0x27   :  { %v176_v3 = vpack.c.bf16 %v168_v0, %v168_v0  ;;  %v177_v4 = vpack.c.bf16 %v169_v1, %v169_v1  ;;  %v167_v5 = vld [vmem:[#allocation15 + $0x28] sm:$0xff]  ;;  %v174_v6 = vpack.c.bf16 %v166_v2, %v166_v2  ;;  %v164_v7 = vld [vmem:[#allocation15 + $0x10] sm:$0xff]  ;;  %v165_v8 = vld [vmem:[#allocation15 + $0x18] sm:$0xff]  ;;  %vm901_vm12 = vcmask 261120   ;;  %s1633_s19 = smov [#allocation16]   ;;  %s1095_s22 = sshll.u32 %s1793_s11, 4  ;;  %s1096_s22 = int_to_ptr.hbm [resolvable:$true] %s1095_s22 }
  0x28   :  { %v175_v9 = vpack.c.bf16 %v167_v5, %v167_v5  ;;  %v172_v10 = vpack.c.bf16 %v164_v7, %v164_v7  ;;  %v173_v14 = vpack.c.bf16 %v165_v8, %v165_v8  ;;  %v162_v15 = vld [vmem:[#allocation15] sm:$0xff]  ;;  %v163_v17 = vld [vmem:[#allocation15 + $0x8] sm:$0xff]  ;;  %v1335_v28 = vld [vmem:[#allocation6] sm:$0xff]  ;;  %s1093_s20 = sshll.u32 %s1633_s19, 4  ;;  %s1094_s20 = int_to_ptr.vmem [resolvable:$true] %s1093_s20 }
  0x29   :  { %v213_v11 = vunpack.c.l.b16 %v176_v3  ;;  %v214_v12 = vunpack.c.l.b16 %v177_v4  ;;  %v211_v13 = vunpack.c.l.b16 %v174_v6  ;;  %v170_v19 = vpack.c.bf16 %v162_v15, %v162_v15  ;;  %v1345_v29 = vld [vmem:[#allocation10 + $0x38] sm:$0xff]  ;;  %v1344_v31 = vld [vmem:[#allocation10 + $0x30] sm:$0xff]  ;;  %v1343_v33 = vld [vmem:[#allocation10 + $0x28] sm:$0xff] }
  0x2a   :  { %v212_v16 = vunpack.c.l.b16 %v175_v9  ;;  %v209_v21 = vunpack.c.l.b16 %v172_v10  ;;  %v210_v22 = vunpack.c.l.b16 %v173_v14  ;;  %v171_v23 = vpack.c.bf16 %v163_v17, %v163_v17  ;;  %v1353_v30 = vld [vmem:[#allocation10 + $0x78] sm:$0xff]  ;;  %413 = vmatpush.bf16.msra.mxu1 %v1345_v29  ;;  %v1352_v32 = vld [vmem:[#allocation10 + $0x70] sm:$0xff]  ;;  %v1351_v34 = vld [vmem:[#allocation10 + $0x68] sm:$0xff] }
  0x2b   :  { %v218_v18 = vpack.c.b16 %v214_v12, %v213_v11  ;;  %v207_v25 = vunpack.c.l.b16 %v170_v19  ;;  %437 = vmatpush.bf16.msra.mxu2 %v1353_v30  ;;  %v1342_v35 = vld [vmem:[#allocation10 + $0x20] sm:$0xff]  ;;  %v1336_v37 = vld [vmem:[#allocation6 + $0x8] sm:$0xff]  ;;  %v1340_v40 = vld [vmem:[#allocation10 + $0x10] sm:$0xff]  ;;  %v468_v4 = vlaneseq }
  0x2c   :  { %v217_v20 = vpack.c.b16 %v212_v16, %v211_v13  ;;  %v216_v24 = vpack.c.b16 %v210_v22, %v209_v21  ;;  %v208_v26 = vunpack.c.l.b16 %v171_v23  ;;  %v1350_v36 = vld [vmem:[#allocation10 + $0x60] sm:$0xff]  ;;  %v1341_v38 = vld [vmem:[#allocation10 + $0x18] sm:$0xff]  ;;  %v1339_v42 = vld [vmem:[#allocation10 + $0x8] sm:$0xff]  ;;  %s489_s25 = smul.u32 2654435769, %s467_s10 }
  0x2d   :  { %237 = vmatpush.bf16.msra.mxu0 %v218_v18  ;;  %v1337_v39 = vld [vmem:[#allocation6 + $0x10] sm:$0xff]  ;;  %v1349_v41 = vld [vmem:[#allocation10 + $0x58] sm:$0xff]  ;;  %v1348_v43 = vld [vmem:[#allocation10 + $0x50] sm:$0xff]  ;;  %v469_v6 = vshrl.u32 %v468_v4, 7  ;;  %v476_v12 = vand.u32 127, %v468_v4 }
  0x2e   :  { %v215_v27 = vpack.c.b16 %v208_v26, %v207_v25  ;;  %414 = vmatpush.bf16.msra.mxu1 %v1344_v31  ;;  %v1338_v44 = vld [vmem:[#allocation10] sm:$0xff]  ;;  %v1347_v45 = vld [vmem:[#allocation10 + $0x48] sm:$0xff]  ;;  %v490_v21 = vstv %s489_s25 }
  0x2f   :  { %438 = vmatpush.bf16.msra.mxu2 %v1352_v32  ;;  %v1346_v46 = vld [vmem:[#allocation10 + $0x40] sm:$0xff]  ;;  %v473_v7 = vadd.s32 32, %v469_v6  ;;  %v472_v8 = vadd.s32 24, %v469_v6  ;;  %v471_v9 = vadd.s32 16, %v469_v6  ;;  %v474_v10 = vadd.s32 40, %v469_v6 }
  0x30   :  { %v470_v13 = vadd.s32 8, %v469_v6  ;;  %v477_v23 = vmul.u32 128, %v469_v6 }
  0x31   :  { %238 = vmatpush.bf16.msra.mxu0 %v217_v20  ;;  %v481_v11 = vmul.u32 128, %v473_v7  ;;  %v480_v14 = vmul.u32 128, %v472_v8  ;;  %v479_v16 = vmul.u32 128, %v471_v9  ;;  %v482_v17 = vmul.u32 128, %v474_v10  ;;  %v1402_v8 = vld [vmem:[%s1789_s7] ss:$0 sm:$0xff] }
  0x32   :  { %415 = vmatpush.bf16.msra.mxu1 %v1343_v33  ;;  %v478_v19 = vmul.u32 128, %v470_v13  ;;  %v1755_v29 = vadd.s32 %v477_v23, %v476_v12  ;;  %s1265_s7 = sld [smem:[#allocation2 + $0x1]] }
  0x33   :  { %439 = vmatpush.bf16.msra.mxu2 %v1351_v34  ;;  %v487_v18 = vadd.s32 %v481_v11, %v476_v12  ;;  %v488_v25 = vadd.s32 %v482_v17, %v476_v12 }
  0x35   :  { %239 = vmatpush.bf16.msra.mxu0 %v216_v24  ;;  %v495_v26 = vadd.s32 %v490_v21, %v487_v18  ;;  %v496_v31 = vadd.s32 %v490_v21, %v488_v25 }
  0x36   :  { %416 = vmatpush.bf16.msra.mxu1 %v1342_v35 }
  0x37   :  { %440 = vmatpush.bf16.msra.mxu2 %v1350_v36  ;;  %v501_v32 = vshrl.u32 %v495_v26, 16  ;;  %v491_v36 = vadd.s32 %v490_v21, %v1755_v29 }
  0x38   :  { %s824_s16 = smul.u32 2654435769, %s1265_s7 }
  0x39   :  { %240 = vmatpush.bf16.msra.mxu0 %v215_v27 }
  0x3a   :  { %417 = vmatpush.bf16.msra.mxu1 %v1341_v38 }
  0x3b   :  { %441 = vmatpush.bf16.msra.mxu2 %v1349_v41 }
  0x3c   :  { %1124 = vmatmul.msk.bf16.vlgmr.msra.gmra.mxu0 %vm223_vm0, %v1335_v28 }
  0x3e   :  { %418 = vmatpush.bf16.msra.mxu1 %v1340_v40  ;;  %v507_v40 = vxor.u32 %v501_v32, %v495_v26 }
  0x3f   :  { %442 = vmatpush.bf16.msra.mxu2 %v1348_v43  ;;  %v497_v43 = vshrl.u32 %v491_v36, 16 }
  0x42   :  { %419 = vmatpush.bf16.msra.mxu1 %v1339_v42 }
  0x43   :  { %443 = vmatpush.bf16.msra.mxu2 %v1347_v45 }
  0x46   :  { %420 = vmatpush.bf16.msra.mxu1 %v1338_v44 }
  0x47   :  { %444 = vmatpush.bf16.msra.mxu2 %v1346_v46  ;;  %v513_v46 = vmul.u32 2146121005, %v507_v40 }
  0x49   :  { %421 = vmatmul.bf16.vlgmr.msra.gmra.mxu1 %v215_v27  ;;  %v1752_v27 = vadd.s32 %v478_v19, %v476_v12 }
  0x4b   :  { %v492_v34 = vadd.s32 %v490_v21, %v1752_v27 }
  0x4c   :  { %1125 = vmatmul.msk.bf16.gmra.mxu0 %vm223_vm0, %v1336_v37 }
  0x4d   :  { %v498_v41 = vshrl.u32 %v492_v34, 16 }
  0x59   :  { %426 = vmatmul.bf16.gmra.mxu1 %v216_v24  ;;  %v1750_v24 = vadd.s32 %v479_v16, %v476_v12 }
  0x5b   :  { %v493_v30 = vadd.s32 %v490_v21, %v1750_v24 }
  0x5c   :  { %1126 = vmatmul.msk.bf16.gmra.mxu0 %vm223_vm0, %v1337_v39  ;;  %v502_v39 = vshrl.u32 %v496_v31, 16 }
  0x5d   :  { %v499_v38 = vshrl.u32 %v493_v30, 16 }
  0x5e   :  { %v508_v45 = vxor.u32 %v502_v39, %v496_v31 }
  0x5f   :  { %v505_v44 = vxor.u32 %v499_v38, %v493_v30 }
  0x69   :  { %431 = vmatmul.bf16.gmra.mxu1 %v217_v20  ;;  %v1746_v20 = vadd.s32 %v480_v14, %v476_v12 }
  0x6b   :  { %v494_v28 = vadd.s32 %v490_v21, %v1746_v20 }
  0x6d   :  { %v500_v35 = vshrl.u32 %v494_v28, 16 }
  0x6f   :  { %v506_v42 = vxor.u32 %v500_v35, %v494_v28 }
  0xb9   :  { %v242_v47 = vpop.f32.mrf.mxu0 }
  0xba   :  { %v257_v48 = vpack.c.bf16 %v242_v47, %v242_v47  ;;  %v504_v47 = vxor.u32 %v498_v41, %v492_v34 }
  0xbc   :  { %v269_v51 = vunpack.c.l.b16 %v257_v48  ;;  %v512_v48 = vmul.u32 2146121005, %v506_v42 }
  0xc1   :  { %v244_v49 = vpop.f32.mrf.mxu0 }
  0xc2   :  { %v258_v50 = vpack.c.bf16 %v244_v49, %v244_v49  ;;  %v503_v49 = vxor.u32 %v497_v43, %v491_v36 }
  0xc4   :  { %v270_v52 = vunpack.c.l.b16 %v258_v50 }
  0xc6   :  { %v275_v53 = vpack.c.b16 %v270_v52, %v269_v51  ;;  %v1742_v5 = vpop.f32.mrf.mxu1  ;;  %v511_v52 = vmul.u32 2146121005, %v505_v44 }
  0xc7   :  { %v423_v34 = vadd.f32 %v1402_v8, %v1742_v5 }
  0xc8   :  { %445 = vmatmul.bf16.vlgmr.msra.gmra.mxu2 %v275_v53  ;;  %v514_v53 = vmul.u32 2146121005, %v508_v45 }
  0xc9   :  { %v247_v54 = vpop.f32.mrf.mxu0 }
  0xca   :  { %v259_v55 = vpack.c.bf16 %v247_v54, %v247_v54  ;;  %v519_v54 = vshrl.u32 %v513_v46, 15 }
  0xcc   :  { %v271_v58 = vunpack.c.l.b16 %v259_v55  ;;  %v510_v55 = vmul.u32 2146121005, %v504_v47 }
  0xce   :  { %v1744_v15 = vpop.f32.mrf.mxu1 }
  0xcf   :  { %v425_v35 = vadd.f32 %v1402_v8, %v1744_v15 }
  0xd1   :  { %v249_v56 = vpop.f32.mrf.mxu0 }
  0xd2   :  { %v260_v57 = vpack.c.bf16 %v249_v56, %v249_v56  ;;  %v518_v56 = vshrl.u32 %v512_v48, 15 }
  0xd4   :  { %v272_v59 = vunpack.c.l.b16 %v260_v57  ;;  %v509_v57 = vmul.u32 2146121005, %v503_v49 }
  0xd6   :  { %v276_v60 = vpack.c.b16 %v272_v59, %v271_v58  ;;  %v427_v33 = vpop.f32.mrf.mxu1  ;;  %v517_v58 = vshrl.u32 %v511_v52, 15  ;;  %v520_v59 = vshrl.u32 %v514_v53, 15 }
  0xd7   :  { %v428_v17 = vadd.f32 %v1402_v8, %v427_v33 }
  0xd8   :  { %450 = vmatmul.bf16.gmra.mxu2 %v276_v60  ;;  %v525_v60 = vxor.u32 %v519_v54, %v513_v46 }
  0xd9   :  { %v252_v61 = vpop.f32.mrf.mxu0 }
  0xda   :  { %v261_v62 = vpack.c.bf16 %v252_v61, %v252_v61  ;;  %v516_v61 = vshrl.u32 %v510_v55, 15 }
  0xdc   :  { %v273_v1 = vunpack.c.l.b16 %v261_v62  ;;  %v524_v62 = vxor.u32 %v518_v56, %v512_v48  ;;  %v522_v4 = vxor.u32 %v516_v61, %v510_v55 }
  0xde   :  { %v429_v50 = vpop.f32.mrf.mxu1  ;;  %v530_v7 = vmul.u32 2221713035, %v524_v62  ;;  %v528_v14 = vmul.u32 2221713035, %v522_v4 }
  0xdf   :  { %v430_v18 = vadd.f32 %v1402_v8, %v429_v50 }
  0xe0   :  { %v536_v16 = vshrl.u32 %v530_v7, 16  ;;  %v534_v31 = vshrl.u32 %v528_v14, 16 }
  0xe1   :  { %v254_v63 = vpop.f32.mrf.mxu0 }
  0xe2   :  { %v262_v0 = vpack.c.bf16 %v254_v63, %v254_v63  ;;  %v515_v63 = vshrl.u32 %v509_v57, 15  ;;  %v542_v32 = vxor.u32 %v536_v16, %v530_v7  ;;  %v540_v45 = vxor.u32 %v534_v31, %v528_v14  ;;  %v1359_v31 = vld [vmem:[#allocation12 + $0x18] sm:$0xff] }
  0xe4   :  { %v274_v2 = vunpack.c.l.b16 %v262_v0  ;;  %v523_v0 = vxor.u32 %v517_v58, %v511_v52  ;;  %v521_v9 = vxor.u32 %v515_v63, %v509_v57  ;;  %v548_v46 = vand.u32 2147483648, %v542_v32  ;;  %v1355_v32 = vld [vmem:[#allocation7 + $0x8] sm:$0xff] }
  0xe5   :  { %v546_v56 = vand.u32 2147483648, %v540_v45 }
  0xe6   :  { %v277_v3 = vpack.c.b16 %v274_v2, %v273_v1  ;;  %v526_v2 = vxor.u32 %v520_v59, %v514_v53  ;;  %v432_v6 = vpop.f32.mrf.mxu1  ;;  %v529_v10 = vmul.u32 2221713035, %v523_v0  ;;  %v527_v19 = vmul.u32 2221713035, %v521_v9 }
  0xe7   :  { %v433_v13 = vadd.f32 %v1402_v8, %v432_v6  ;;  %vm554_vm2 = vcmp.eq.s32.totalorder %v548_v46, 0  ;;  %vm552_vm5 = vcmp.eq.s32.totalorder %v546_v56, 0 }
  0xe8   :  { %455 = vmatmul.bf16.gmra.mxu2 %v277_v3  ;;  %v531_v3 = vmul.u32 2221713035, %v525_v60  ;;  %v532_v11 = vmul.u32 2221713035, %v526_v2  ;;  %v535_v21 = vshrl.u32 %v529_v10, 16  ;;  %v533_v39 = vshrl.u32 %v527_v19, 16 }
  0xea   :  { %v537_v12 = vshrl.u32 %v531_v3, 16  ;;  %v538_v25 = vshrl.u32 %v532_v11, 16  ;;  %v541_v40 = vxor.u32 %v535_v21, %v529_v10  ;;  %v539_v52 = vxor.u32 %v533_v39, %v527_v19  ;;  %v1363_v21 = vld [vmem:[#allocation12 + $0x38] sm:$0xff]  ;;  %v1356_v39 = vld [vmem:[#allocation12] sm:$0xff] }
  0xec   :  { %v543_v26 = vxor.u32 %v537_v12, %v531_v3  ;;  %v544_v33 = vxor.u32 %v538_v25, %v532_v11  ;;  %v547_v5 = vand.u32 2147483648, %v541_v40  ;;  %v545_v60 = vand.u32 2147483648, %v539_v52  ;;  %v1354_v25 = vld [vmem:[#allocation7] sm:$0xff] }
  0xed   :  { %v1369_v40 = vld [vmem:[#allocation12 + $0x68] sm:$0xff] }
  0xee   :  { %v434_v41 = vpop.f32.mrf.mxu1  ;;  %v549_v42 = vand.u32 2147483648, %v543_v26  ;;  %v550_v15 = vand.u32 2147483648, %v544_v33  ;;  %vm553_vm3 = vcmp.eq.s32.totalorder %v547_v5, 0  ;;  %vm551_vm6 = vcmp.eq.s32.totalorder %v545_v60, 0  ;;  %v1362_v26 = vld [vmem:[#allocation12 + $0x30] sm:$0xff]  ;;  %v1367_v33 = vld [vmem:[#allocation12 + $0x58] sm:$0xff] }
  0xef   :  { %v435_v49 = vadd.f32 %v1402_v8, %v434_v41  ;;  %v1368_v41 = vld [vmem:[#allocation12 + $0x60] sm:$0xff] }
  0xf0   :  { %vm555_vm1 = vcmp.eq.s32.totalorder %v549_v42, 0  ;;  %vm556_vm4 = vcmp.eq.s32.totalorder %v550_v15, 0  ;;  %v1366_v42 = vld [vmem:[#allocation12 + $0x50] sm:$0xff] }
 0x14b   :  { %v1748_v22 = vpop.f32.mrf.mxu2 }
 0x14c   :  { %v447_v47 = vadd.f32 %v1748_v22, %v423_v34  ;;  %v1358_v34 = vld [vmem:[#allocation12 + $0x10] sm:$0xff] }
 0x14e   :  { %v461_v57 = vmax.f32 %v447_v47, 0.0 }
 0x150   :  { %v557_v0 = vmul.f32 2.0, %v461_v57  ;;  %v1379_v57 = vld [vmem:[#allocation13 + $0x30] sm:$0xff] }
 0x152   :  { %v563_v10 = vsel %vm551_vm6, %v557_v0, 0.0 }
 0x153   :  { %v448_v37 = vpop.f32.mrf.mxu2  ;;  %v569_v14 = vpack.c.bf16 %v563_v10, %v563_v10 }
 0x154   :  { %v449_v43 = vadd.f32 %v448_v37, %v425_v35  ;;  %v1371_v35 = vld [vmem:[#allocation12 + $0x78] sm:$0xff] }
 0x155   :  { %v595_v19 = vunpack.c.l.b16 %v569_v14  ;;  %800 = vmatpush.bf16.msrb.mxu0 %v1371_v35 }
 0x15b   :  { %v451_v51 = vpop.f32.mrf.mxu2 }
 0x15c   :  { %v452_v36 = vadd.f32 %v451_v51, %v428_v17  ;;  %v462_v51 = vmax.f32 %v449_v43, 0.0  ;;  %v1365_v43 = vld [vmem:[#allocation12 + $0x48] sm:$0xff] }
 0x15e   :  { %v463_v48 = vmax.f32 %v452_v36, 0.0  ;;  %v558_v22 = vmul.f32 2.0, %v462_v51  ;;  %v1357_v36 = vld [vmem:[#allocation12 + $0x8] sm:$0xff] }
 0x160   :  { %v559_v37 = vmul.f32 2.0, %v463_v48  ;;  %v564_v6 = vsel %vm552_vm5, %v558_v22, 0.0  ;;  %v1377_v22 = vld [vmem:[#allocation13 + $0x20] sm:$0xff] }
 0x161   :  { %v570_v11 = vpack.c.bf16 %v564_v6, %v564_v6  ;;  %v1374_v6 = vld [vmem:[#allocation13 + $0x8] sm:$0xff] }
 0x163   :  { %v453_v1 = vpop.f32.mrf.mxu2 }
 0x164   :  { %v454_v28 = vadd.f32 %v453_v1, %v430_v18  ;;  %v565_v1 = vsel %vm553_vm3, %v559_v37, 0.0  ;;  %v596_v18 = vunpack.c.l.b16 %v570_v11 }
 0x165   :  { %v571_v7 = vpack.c.bf16 %v565_v1, %v565_v1 }
 0x166   :  { %v464_v44 = vmax.f32 %v454_v28, 0.0  ;;  %v1361_v28 = vld [vmem:[#allocation12 + $0x28] sm:$0xff] }
 0x167   :  { %v597_v16 = vunpack.c.l.b16 %v571_v7 }
 0x168   :  { %v560_v54 = vmul.f32 2.0, %v464_v44  ;;  %v1364_v44 = vld [vmem:[#allocation12 + $0x40] sm:$0xff] }
 0x16a   :  { %v566_v61 = vsel %vm554_vm2, %v560_v54, 0.0  ;;  %v1380_v54 = vld [vmem:[#allocation13 + $0x38] sm:$0xff] }
 0x16b   :  { %v456_v23 = vpop.f32.mrf.mxu2  ;;  %v572_v3 = vpack.c.bf16 %v566_v61, %v566_v61  ;;  %1059 = vmatpush.bf16.msrb.mxu1 %v1380_v54 }
 0x16c   :  { %v457_v30 = vadd.f32 %v456_v23, %v433_v13  ;;  %v601_v23 = vpack.c.b16 %v596_v18, %v595_v19  ;;  %v1403_v19 = vld [vmem:[%s1790_s8] ss:$0 sm:$0xff] }
 0x16d   :  { %v598_v13 = vunpack.c.l.b16 %v572_v3 }
 0x16e   :  { %v465_v38 = vmax.f32 %v457_v30, 0.0  ;;  %v1360_v30 = vld [vmem:[#allocation12 + $0x20] sm:$0xff] }
 0x16f   :  { %v602_v17 = vpack.c.b16 %v598_v13, %v597_v16  ;;  %1060 = vmatpush.bf16.msrb.mxu1 %v1379_v57 }
 0x170   :  { %v561_v50 = vmul.f32 2.0, %v465_v38  ;;  %v1370_v38 = vld [vmem:[#allocation12 + $0x70] sm:$0xff] }
 0x171   :  { %801 = vmatpush.bf16.msrb.mxu0 %v1370_v38 }
 0x172   :  { %v567_v59 = vsel %vm555_vm1, %v561_v50, 0.0 }
 0x173   :  { %v458_v53 = vpop.f32.mrf.mxu2  ;;  %v573_v63 = vpack.c.bf16 %v567_v59, %v567_v59  ;;  %v825_v59 = vstv %s824_s16 }
 0x174   :  { %v459_v55 = vadd.f32 %v458_v53, %v435_v49  ;;  %v826_v60 = vadd.s32 %v825_v59, %v1755_v29  ;;  %v1373_v29 = vld [vmem:[#allocation13] sm:$0xff] }
 0x175   :  { %v599_v8 = vunpack.c.l.b16 %v573_v63  ;;  %802 = vmatpush.bf16.msrb.mxu0 %v1369_v40  ;;  %v1376_v63 = vld [vmem:[#allocation13 + $0x18] sm:$0xff] }
 0x176   :  { %v466_v58 = vmax.f32 %v459_v55, 0.0  ;;  %v830_v61 = vshrl.u32 %v826_v60, 16 }
 0x178   :  { %v562_v62 = vmul.f32 2.0, %v466_v58  ;;  %v1378_v58 = vld [vmem:[#allocation13 + $0x28] sm:$0xff]  ;;  %v834_v0 = vxor.u32 %v830_v61, %v826_v60 }
 0x179   :  { %803 = vmatpush.bf16.msrb.mxu0 %v1368_v41  ;;  %1061 = vmatpush.bf16.msrb.mxu1 %v1378_v58 }
 0x17a   :  { %v568_v2 = vsel %vm556_vm4, %v562_v62, 0.0  ;;  %v827_v62 = vadd.s32 %v825_v59, %v1752_v27  ;;  %v838_v3 = vmul.u32 2146121005, %v834_v0  ;;  %v829_v27 = vadd.s32 %v825_v59, %v1746_v20 }
 0x17b   :  { %v574_v4 = vpack.c.bf16 %v568_v2, %v568_v2  ;;  %v1375_v2 = vld [vmem:[#allocation13 + $0x10] sm:$0xff] }
 0x17c   :  { %v831_v1 = vshrl.u32 %v827_v62, 16  ;;  %v842_v7 = vshrl.u32 %v838_v3, 15  ;;  %v833_v18 = vshrl.u32 %v829_v27, 16 }
 0x17d   :  { %v600_v9 = vunpack.c.l.b16 %v574_v4  ;;  %804 = vmatpush.bf16.msrb.mxu0 %v1367_v33  ;;  %1062 = vmatpush.bf16.msrb.mxu1 %v1377_v22 }
 0x17e   :  { %v835_v4 = vxor.u32 %v831_v1, %v827_v62  ;;  %v846_v10 = vxor.u32 %v842_v7, %v838_v3 }
 0x17f   :  { %v603_v12 = vpack.c.b16 %v600_v9, %v599_v8  ;;  %v828_v9 = vadd.s32 %v825_v59, %v1750_v24  ;;  %v837_v24 = vxor.u32 %v833_v18, %v829_v27  ;;  %v1386_v18 = vld [vmem:[#allocation13 + $0x68] sm:$0xff] }
 0x180   :  { %v839_v8 = vmul.u32 2146121005, %v835_v4  ;;  %v850_v14 = vmul.u32 2221713035, %v846_v10 }
 0x181   :  { %619 = vmatpush.bf16.msra.mxu3 %v603_v12  ;;  %805 = vmatpush.bf16.msrb.mxu0 %v1366_v42  ;;  %v832_v12 = vshrl.u32 %v828_v9, 16  ;;  %v841_v20 = vmul.u32 2146121005, %v837_v24  ;;  %v1381_v24 = vld [vmem:[#allocation13 + $0x40] sm:$0xff] }
 0x182   :  { %1063 = vmatpush.bf16.msrb.mxu1 %v1376_v63  ;;  %v843_v11 = vshrl.u32 %v839_v8, 15 }
 0x183   :  { %v845_v41 = vshrl.u32 %v841_v20, 15 }
 0x184   :  { %v847_v16 = vxor.u32 %v843_v11, %v839_v8 }
 0x185   :  { %620 = vmatpush.bf16.msra.mxu3 %v602_v17  ;;  %806 = vmatpush.bf16.msrb.mxu0 %v1365_v43 }
 0x186   :  { %1064 = vmatpush.bf16.msrb.mxu1 %v1375_v2 }
 0x189   :  { %621 = vmatpush.bf16.msra.mxu3 %v601_v23  ;;  %807 = vmatpush.bf16.msrb.mxu0 %v1364_v44 }
 0x18a   :  { %1065 = vmatpush.bf16.msrb.mxu1 %v1374_v6 }
 0x18c   :  { %1199 = vmatmul.msk.bf16.vlgmr.msra.gmra.mxu3 %vm607_vm7, %v1354_v25 }
 0x18d   :  { %781 = vmatpush.bf16.msrb.mxu3 %v1363_v21  ;;  %v854_v21 = vshrl.u32 %v850_v14, 16 }
 0x18e   :  { %1066 = vmatpush.bf16.msrb.mxu1 %v1373_v29 }
 0x191   :  { %782 = vmatpush.bf16.msrb.mxu3 %v1362_v26 }
 0x195   :  { %783 = vmatpush.bf16.msrb.mxu3 %v1361_v28 }
 0x199   :  { %784 = vmatpush.bf16.msrb.mxu3 %v1360_v30 }
 0x19c   :  { %1200 = vmatmul.msk.bf16.gmra.mxu3 %vm607_vm7, %v1355_v32 }
 0x19d   :  { %785 = vmatpush.bf16.msrb.mxu3 %v1359_v31  ;;  %v858_v31 = vxor.u32 %v854_v21, %v850_v14  ;;  %v1372_v14 = vld [vmem:[#allocation9] sm:$0xff] }
 0x19e   :  { %v1384_v21 = vld [vmem:[#allocation13 + $0x58] sm:$0xff] }
 0x19f   :  { %v862_v38 = vand.u32 2147483648, %v858_v31 }
 0x1a1   :  { %786 = vmatpush.bf16.msrb.mxu3 %v1358_v34  ;;  %vm866_vm8 = vcmp.eq.s32.totalorder %v862_v38, 0 }
 0x1a5   :  { %787 = vmatpush.bf16.msrb.mxu3 %v1357_v36 }
 0x1a9   :  { %788 = vmatpush.bf16.msrb.mxu3 %v1356_v39 }
 0x1ac   :  { %789 = vmatmul.bf16.vlgmr.msrb.gmra.mxu3 %v601_v23  ;;  %v851_v23 = vmul.u32 2221713035, %v847_v16  ;;  %v1388_v16 = vld [vmem:[#allocation13 + $0x78] sm:$0xff] }
 0x1ad   :  { %1073 = vmatpush.bf16.msrb.mxu2 %v1388_v16 }
 0x1ae   :  { %v855_v32 = vshrl.u32 %v851_v23, 16 }
 0x1b0   :  { %v859_v39 = vxor.u32 %v855_v32, %v851_v23  ;;  %v1383_v23 = vld [vmem:[#allocation13 + $0x50] sm:$0xff] }
 0x1b2   :  { %v863_v44 = vand.u32 2147483648, %v859_v39 }
 0x1b4   :  { %vm867_vm9 = vcmp.eq.s32.totalorder %v863_v44, 0 }
 0x1bc   :  { %794 = vmatmul.bf16.gmra.mxu3 %v602_v17  ;;  %v836_v17 = vxor.u32 %v832_v12, %v828_v9 }
 0x1be   :  { %v840_v25 = vmul.u32 2146121005, %v836_v17  ;;  %v1387_v17 = vld [vmem:[#allocation13 + $0x70] sm:$0xff] }
 0x1bf   :  { %1074 = vmatpush.bf16.msrb.mxu2 %v1387_v17 }
 0x1c0   :  { %v844_v34 = vshrl.u32 %v840_v25, 15 }
 0x1c2   :  { %v848_v40 = vxor.u32 %v844_v34, %v840_v25  ;;  %v1382_v25 = vld [vmem:[#allocation13 + $0x48] sm:$0xff] }
 0x1c3   :  { %1075 = vmatpush.bf16.msrb.mxu2 %v1386_v18 }
 0x20f   :  { %v623_v45 = vpop.f32.mrf.mxu3 }
 0x210   :  { %v633_v46 = vpack.c.bf16 %v623_v45, %v623_v45  ;;  %v852_v45 = vmul.u32 2221713035, %v848_v40 }
 0x212   :  { %v641_v49 = vunpack.c.l.b16 %v633_v46  ;;  %v849_v46 = vxor.u32 %v845_v41, %v841_v20 }
 0x217   :  { %v625_v47 = vpop.f32.mrf.mxu3 }
 0x218   :  { %v634_v48 = vpack.c.bf16 %v625_v47, %v625_v47 }
 0x21a   :  { %v642_v50 = vunpack.c.l.b16 %v634_v48 }
 0x21c   :  { %v645_v52 = vpack.c.b16 %v642_v50, %v641_v49 }
 0x21e   :  { %808 = vmatmul.bf16.vlgmr.msrb.gmra.mxu0 %v645_v52  ;;  %v856_v52 = vshrl.u32 %v852_v45, 16 }
 0x21f   :  { %v628_v5 = vpop.f32.mrf.mxu3 }
 0x220   :  { %v635_v53 = vpack.c.bf16 %v628_v5, %v628_v5  ;;  %v853_v5 = vmul.u32 2221713035, %v849_v46  ;;  %v860_v57 = vxor.u32 %v856_v52, %v852_v45 }
 0x222   :  { %v643_v55 = vunpack.c.l.b16 %v635_v53  ;;  %v864_v62 = vand.u32 2147483648, %v860_v57 }
 0x224   :  { %vm868_vm10 = vcmp.eq.s32.totalorder %v864_v62, 0 }
 0x227   :  { %v630_v15 = vpop.f32.mrf.mxu3 }
 0x228   :  { %v636_v51 = vpack.c.bf16 %v630_v15, %v630_v15 }
 0x22a   :  { %v644_v56 = vunpack.c.l.b16 %v636_v51 }
 0x22c   :  { %v646_v37 = vpack.c.b16 %v644_v56, %v643_v55 }
 0x22e   :  { %813 = vmatmul.bf16.gmra.mxu0 %v646_v37  ;;  %v857_v37 = vshrl.u32 %v853_v5, 16 }
 0x22f   :  { %v790_v13 = vpop.f32.mrf.mxu3 }
 0x230   :  { %v791_v26 = vadd.f32 %v1403_v19, %v790_v13  ;;  %v861_v0 = vxor.u32 %v857_v37, %v853_v5 }
 0x232   :  { %v865_v4 = vand.u32 2147483648, %v861_v0 }
 0x234   :  { %vm869_vm11 = vcmp.eq.s32.totalorder %v865_v4, 0 }
 0x237   :  { %v792_v28 = vpop.f32.mrf.mxu3 }
 0x238   :  { %v793_v33 = vadd.f32 %v1403_v19, %v792_v28 }
 0x23f   :  { %v795_v48 = vpop.f32.mrf.mxu3 }
 0x240   :  { %v796_v51 = vadd.f32 %v1403_v19, %v795_v48 }
 0x247   :  { %v797_v61 = vpop.f32.mrf.mxu3 }
 0x248   :  { %v798_v1 = vadd.f32 %v1403_v19, %v797_v61  ;;  %v1385_v19 = vld [vmem:[#allocation13 + $0x60] sm:$0xff] }
 0x249   :  { %1076 = vmatpush.bf16.msrb.mxu2 %v1385_v19 }
 0x24d   :  { %1077 = vmatpush.bf16.msrb.mxu2 %v1384_v21 }
 0x251   :  { %1078 = vmatpush.bf16.msrb.mxu2 %v1383_v23 }
 0x255   :  { %1079 = vmatpush.bf16.msrb.mxu2 %v1382_v25 }
 0x259   :  { %1080 = vmatpush.bf16.msrb.mxu2 %v1381_v24 }
 0x29b   :  { %v809_v30 = vpop.f32.mrf.mxu0 }
 0x29c   :  { %v810_v35 = vadd.f32 %v809_v30, %v791_v26 }
 0x29e   :  { %v819_v36 = vmax.f32 %v810_v35, 0.0 }
 0x2a0   :  { %v870_v42 = vmul.f32 2.0, %v819_v36  ;;  %v1404_v36 = vld [vmem:[%s1791_s9] ss:$0 sm:$0xff] }
 0x2a2   :  { %v874_v49 = vsel %vm866_vm8, %v870_v42, 0.0 }
 0x2a3   :  { %v811_v43 = vpop.f32.mrf.mxu0  ;;  %v878_v15 = vpack.c.bf16 %v874_v49, %v874_v49 }
 0x2a4   :  { %v812_v47 = vadd.f32 %v811_v43, %v793_v33 }
 0x2a5   :  { %v893_v59 = vunpack.c.l.b16 %v878_v15 }
 0x2a6   :  { %v820_v50 = vmax.f32 %v812_v47, 0.0 }
 0x2a8   :  { %v871_v53 = vmul.f32 2.0, %v820_v50 }
 0x2aa   :  { %v875_v54 = vsel %vm867_vm9, %v871_v53, 0.0 }
 0x2ab   :  { %v879_v55 = vpack.c.bf16 %v875_v54, %v875_v54  ;;  %v814_v56 = vpop.f32.mrf.mxu0 }
 0x2ac   :  { %v815_v58 = vadd.f32 %v814_v56, %v796_v51 }
 0x2ad   :  { %v894_v60 = vunpack.c.l.b16 %v879_v55 }
 0x2ae   :  { %v821_v22 = vmax.f32 %v815_v58, 0.0 }
 0x2af   :  { %v897_v63 = vpack.c.b16 %v894_v60, %v893_v59 }
 0x2b0   :  { %v872_v2 = vmul.f32 2.0, %v821_v22 }
 0x2b1   :  { %1067 = vmatmul.bf16.vlgmr.msrb.gmra.mxu1 %v897_v63 }
 0x2b2   :  { %v876_v7 = vsel %vm868_vm10, %v872_v2, 0.0 }
 0x2b3   :  { %v816_v3 = vpop.f32.mrf.mxu0  ;;  %v880_v29 = vpack.c.bf16 %v876_v7, %v876_v7 }
 0x2b4   :  { %v817_v6 = vadd.f32 %v816_v3, %v798_v1 }
 0x2b5   :  { %v895_v12 = vunpack.c.l.b16 %v880_v29 }
 0x2b6   :  { %v822_v8 = vmax.f32 %v817_v6, 0.0 }
 0x2b8   :  { %v873_v9 = vmul.f32 2.0, %v822_v8 }
 0x2ba   :  { %v877_v10 = vsel %vm869_vm11, %v873_v9, 0.0 }
 0x2bb   :  { %v881_v11 = vpack.c.bf16 %v877_v10, %v877_v10 }
 0x2bd   :  { %v896_v27 = vunpack.c.l.b16 %v881_v11 }
 0x2bf   :  { %v898_v13 = vpack.c.b16 %v896_v27, %v895_v12 }
 0x2c1   :  { %911 = vmatpush.bf16.msra.mxu3 %v898_v13 }
 0x2c5   :  { %912 = vmatpush.bf16.msra.mxu3 %v897_v63 }
 0x2c8   :  { %1270 = vmatmul.msk.bf16.vlgmr.msra.gmra.mxu3 %vm901_vm12, %v1372_v14 }
 0x32e   :  { %v1068_v35 = vpop.f32.mrf.mxu1 }
 0x32f   :  { %v1069_v38 = vadd.f32 %v1404_v36, %v1068_v35 }
 0x336   :  { %v1070_v41 = vpop.f32.mrf.mxu1 }
 0x337   :  { %v1071_v33 = vadd.f32 %v1404_v36, %v1070_v41 }
 0x34b   :  { %v914_v26 = vpop.f32.mrf.mxu3 }
 0x34c   :  { %v919_v28 = vpack.c.bf16 %v914_v26, %v914_v26 }
 0x34e   :  { %v923_v32 = vunpack.c.l.b16 %v919_v28 }
 0x353   :  { %v916_v30 = vpop.f32.mrf.mxu3 }
 0x354   :  { %v920_v31 = vpack.c.bf16 %v916_v30, %v916_v30 }
 0x356   :  { %v924_v34 = vunpack.c.l.b16 %v920_v31 }
 0x358   :  { %v925_v20 = vpack.c.b16 %v924_v34, %v923_v32 }
 0x35a   :  { %1081 = vmatmul.bf16.vlgmr.msrb.gmra.mxu2 %v925_v20 }
 0x3dd   :  { %v1082_v39 = vpop.f32.mrf.mxu2 }
 0x3de   :  { %v1083_v40 = vadd.f32 %v1082_v39, %v1069_v38 }
 0x3e0   :  { %1087 = vst [vmem:[#allocation16] sm:$0xff] %v1083_v40 }
 0x3e5   :  { %v1084_v42 = vpop.f32.mrf.mxu2 }
 0x3e6   :  { %v1085_v43 = vadd.f32 %v1084_v42, %v1071_v33 }
 0x3e8   :  { %1088 = vst [vmem:[#allocation16 + $0x8] sm:$0xff] %v1085_v43 }
 0x3e9   :  { %1101 = dma.vmem_to_hbm [thread:$0]  %s1094_s20, 256, %s1096_s22, [#allocation4], %s1631_s13, %s1631_s13, %s1632_s14  }
 0x3ea   :  { %1619 = dma.done.wait [#allocation4], 256  }
 0x3eb   :  { %1620 = vsyncadd [#allocation4], 4294967040 }
 0x3ec   :  { %1106 = vsyncpa [#allocation3], 1 }
 0x3ed   :  { %1107 = vsyncpa [#allocation8], 1 }
 0x3ee   :  { %1108 = vsyncpa [#allocation11], 1 }
 0x3ef   :  { %1109 = vsyncpa [#allocation14], 1 }
 0x3f0   :  { %1110 = vsyncpa [#allocation4], 1 }
 0x3f1   :  { %1111 = vsyncpa [#allocation5], 1 }

</bundles_post_ra>
